<compile_context>
chip_gen: v7x
topology: tpu7x:2x2x1
jax: 0.10.0
libtpu: 0.0.40
codegen_flags: <defaults>
</compile_context>

<pallas_src>
import jax
import jax.numpy as jnp
from jax.experimental import pallas as pl
from jax.experimental.pallas import tpu as pltpu


# ---------------------------------------------------------------------------
# Tiled matmul kernels: f32 VMEM accumulation, block-sparse skip on the LHS,
# optional fused bias add on the last reduction step.
#
# Scalar-prefetch operands (P2):
#   nz_ref   : (grid_m, grid_k) int32  -- nonzero flag for LHS tile (i, kk)
#   redir_ref: (grid_m, grid_k) int32  -- index of the most recent nonzero k-tile
#              (<= kk); index_maps point zero tiles at it so the pipeline keeps
#              the already-resident block instead of DMA-ing an all-zero tile.
# ---------------------------------------------------------------------------
def _mm_kernel(nz_ref, redir_ref, a_ref, b_ref, o_ref, acc_ref):
    del redir_ref  # consumed by the index_maps only
    i = pl.program_id(0)
    kk = pl.program_id(2)

    @pl.when(kk == 0)
    def _init():
        acc_ref[...] = jnp.zeros_like(acc_ref)

    @pl.when(nz_ref[i, kk] != 0)
    def _accum():
        acc_ref[...] += jnp.dot(a_ref[...], b_ref[...],
                                preferred_element_type=jnp.float32)

    @pl.when(kk == pl.num_programs(2) - 1)
    def _finalize():
        o_ref[...] = acc_ref[...].astype(o_ref.dtype)


def _mm_bias_kernel(nz_ref, redir_ref, a_ref, b_ref, bias_ref, o_ref, acc_ref):
    del redir_ref
    i = pl.program_id(0)
    kk = pl.program_id(2)

    @pl.when(kk == 0)
    def _init():
        acc_ref[...] = jnp.zeros_like(acc_ref)

    @pl.when(nz_ref[i, kk] != 0)
    def _accum():
        acc_ref[...] += jnp.dot(a_ref[...], b_ref[...],
                                preferred_element_type=jnp.float32)

    @pl.when(kk == pl.num_programs(2) - 1)
    def _finalize():
        o_ref[...] = (acc_ref[...] + bias_ref[...]).astype(o_ref.dtype)


# ---------------------------------------------------------------------------
# Padding / tile-selection helpers.
# ---------------------------------------------------------------------------
def _round_up(x, m):
    return ((x + m - 1) // m) * m


def _pad2(x, rows, cols):
    pr, pc = rows - x.shape[0], cols - x.shape[1]
    if pr == 0 and pc == 0:
        return x
    return jnp.pad(x, ((0, pr), (0, pc)))


def _largest_tile(dim, cap):
    """Largest multiple of 128 that divides `dim` (itself a 128-multiple), <= cap."""
    cap = max(128, min(cap, dim))
    best = 128
    t = 128
    while t <= cap:
        if dim % t == 0:
            best = t
        t += 128
    return best


def _vmem_budget_bytes():
    """Generation-aware VMEM budget: ~75% of per-core VMEM, capped at 96 MiB.

    v7x: 64 MiB / TensorCore -> ~48 MiB budget; v5e/v6e: 128 MiB -> 96 MiB.
    Falls back to the conservative v7x figure if the query is unavailable.
    """
    try:
        cap = int(pltpu.get_tpu_info().vmem_capacity_bytes)
    except Exception:
        cap = 0
    if cap <= 0:
        cap = 64 * 1024 * 1024
    return min((cap * 3) // 4, 96 * 1024 * 1024)


def _select_tiles(m, n, k, a_bytes, b_bytes, o_bytes, vmem_budget):
    """Pick (tm, tn, tk) for an (m, k) @ (k, n) matmul (dims already 128-multiples).

    Largest divisor tiles under caps (1024, 512, 2048), shrunk until the live
    working set fits the VMEM budget.  tm is capped at m//2 so grid_m >= 2 and
    both v7x TensorCores get work even when grid_n == 1.
    """
    cap_m, cap_n, cap_k = 1024, 512, 2048
    if m >= 256:
        cap_m = min(cap_m, m // 2)

    def live(tm, tn, tk):
        return (2 * tm * tk * a_bytes        # A, double-buffered
                + 2 * tk * tn * b_bytes      # B, double-buffered
                + tm * tn * 4                # f32 accumulator
                + 2 * tm * tn * o_bytes      # out, double-buffered
                + 2 * tn * 4)                # bias

    while True:
        tm = _largest_tile(m, cap_m)
        tn = _largest_tile(n, cap_n)
        tk = _largest_tile(k, cap_k)
        if (live(tm, tn, tk) <= vmem_budget
                or (cap_m <= 128 and cap_n <= 128 and cap_k <= 128)):
            return tm, tn, tk
        if cap_k > 128 and cap_k >= max(cap_m, cap_n):
            cap_k //= 2
        elif cap_m > 128 and cap_m >= cap_n:
            cap_m //= 2
        else:
            cap_n //= 2


def _redirect_indices(tile_mask):
    """redir[i, kk] = index of the most recent nonzero k-tile <= kk (0 if none)."""
    gk = tile_mask.shape[1]
    ks = jnp.arange(gk, dtype=jnp.int32)[None, :]
    marked = jnp.where(tile_mask != 0, ks, jnp.int32(-1))
    redir = jax.lax.cummax(marked, axis=1)
    return jnp.maximum(redir, 0).astype(jnp.int32)


# ---------------------------------------------------------------------------
# Tiled (optionally block-sparse) matmul: C = A @ B (+ bias).
# ---------------------------------------------------------------------------
def pallas_matmul(a, b, bias=None, out_dtype=jnp.float32, tiles=None,
                  tile_mask=None, vmem_budget=None):
    m, k = a.shape
    k2, n = b.shape
    assert k == k2, (a.shape, b.shape)

    if vmem_budget is None:
        vmem_budget = _vmem_budget_bytes()
    if tiles is None:
        tiles = _select_tiles(m, n, k, a.dtype.itemsize, b.dtype.itemsize,
                              jnp.dtype(out_dtype).itemsize, vmem_budget)
    tm, tn, tk = tiles
    gm, gn, gk = m // tm, n // tn, k // tk

    if tile_mask is None:
        tile_mask = jnp.ones((gm, gk), jnp.int32)
    tile_mask = tile_mask.astype(jnp.int32)
    assert tile_mask.shape == (gm, gk), (tile_mask.shape, (gm, gk))
    redirect = _redirect_indices(tile_mask)

    # Zero LHS tiles are redirected to the last nonzero k-tile, so the pipeline
    # re-uses the resident block (no DMA); the kernel skips the dot via nz_ref.
    def a_map(i, j, kk, nz, redir):
        return (i, redir[i, kk])

    def b_map(i, j, kk, nz, redir):
        return (redir[i, kk], j)

    def o_map(i, j, kk, nz, redir):
        return (i, j)

    in_specs = [pl.BlockSpec((tm, tk), a_map),
                pl.BlockSpec((tk, tn), b_map)]
    args = [tile_mask, redirect, a, b]
    kernel = _mm_kernel
    if bias is not None:
        in_specs.append(pl.BlockSpec((1, tn), lambda i, j, kk, nz, redir: (0, j)))
        args.append(bias)
        kernel = _mm_bias_kernel

    out_itemsize = jnp.dtype(out_dtype).itemsize
    # Advisory cost: account for tile re-reads (A streamed gn times, B gm times).
    cost = pl.CostEstimate(
        flops=2 * m * n * k,
        transcendentals=0,
        bytes_accessed=(a.size * a.dtype.itemsize * gn
                        + b.size * b.dtype.itemsize * gm
                        + m * n * out_itemsize),
    )

    return pl.pallas_call(
        kernel,
        out_shape=jax.ShapeDtypeStruct((m, n), out_dtype),
        grid_spec=pltpu.PrefetchScalarGridSpec(
            num_scalar_prefetch=2,
            grid=(gm, gn, gk),
            in_specs=in_specs,
            out_specs=pl.BlockSpec((tm, tn), o_map),
            scratch_shapes=[pltpu.VMEM((tm, tn), jnp.float32)],
        ),
        compiler_params=pltpu.CompilerParams(
            dimension_semantics=("parallel", "parallel", "arbitrary"),
            vmem_limit_bytes=int(vmem_budget),
        ),
        cost_estimate=cost,
    )(*args)


# ---------------------------------------------------------------------------
# PyG gcn_norm (add_self_loops=True) -> dense normalized adjacency, built
# directly at the padded size and target dtype (no separate N^2 pad/cast pass).
# ---------------------------------------------------------------------------
def gcn_norm_dense(edge_index, num_nodes, n_pad=None, dtype=jnp.float32):
    """A_hat[dst, src] = deg^{-1/2}[src] * deg^{-1/2}[dst], with self loops."""
    # TODO(synk): for large, truly sparse graphs replace the dense adjacency with
    # a CSR gather/scatter propagation kernel instead of a block-sparse dense matmul.
    if n_pad is None:
        n_pad = num_nodes
    src, dst = edge_index[0], edge_index[1]
    loop = jnp.arange(num_nodes, dtype=edge_index.dtype)
    src = jnp.concatenate([src, loop])
    dst = jnp.concatenate([dst, loop])
    ew = jnp.ones_like(src, dtype=jnp.float32)
    deg = jnp.zeros((num_nodes,), jnp.float32).at[dst].add(ew)
    deg_inv_sqrt = jnp.where(deg > 0, jax.lax.rsqrt(deg), 0.0)
    norm = deg_inv_sqrt[src] * ew * deg_inv_sqrt[dst]
    # Scatter directly into the padded, target-dtype buffer; padded rows/cols
    # stay exactly zero.
    a_hat = (jnp.zeros((n_pad, n_pad), dtype)
             .at[dst, src].add(norm.astype(dtype)))
    return a_hat


def adjacency_tile_mask(edge_index, num_nodes, n_pad, tm, tk):
    """(n_pad//tm, n_pad//tk) int32 map of A_hat tiles touched by any edge/self-loop."""
    src, dst = edge_index[0], edge_index[1]
    loop = jnp.arange(num_nodes, dtype=edge_index.dtype)
    rows = jnp.concatenate([dst, loop]) // tm
    cols = jnp.concatenate([src, loop]) // tk
    counts = jnp.zeros((n_pad // tm, n_pad // tk), jnp.int32).at[rows, cols].add(1)
    return (counts > 0).astype(jnp.int32)


# ---------------------------------------------------------------------------
# SGC forward: A_hat @ A_hat @ X @ W + b, as chained tiled Pallas matmuls.
# ---------------------------------------------------------------------------
def sgc_forward(a_hat_padded, x, w, b, edge_index=None):
    n, f_in = x.shape
    f_out = w.shape[1]
    n_pad = a_hat_padded.shape[0]
    assert a_hat_padded.shape == (n_pad, n_pad) and n_pad % 128 == 0 and n_pad >= n

    fi_pad = _round_up(f_in, 128)
    fo_pad = _round_up(f_out, 128)
    vmem_budget = _vmem_budget_bytes()

    x_p = _pad2(x, n_pad, fi_pad).astype(jnp.bfloat16)
    w_p = _pad2(w, fi_pad, fo_pad).astype(jnp.bfloat16)
    b_p = _pad2(b, 1, fo_pad).astype(jnp.float32)
    a_p = a_hat_padded.astype(jnp.bfloat16)  # already padded/bf16 -> no-op cast

    # Both A_hat propagations share the same LHS tiling -> one tile mask (built
    # from edge_index, never from the dense matrix) serves both hops.
    prop_width = fo_pad if f_out < f_in else fi_pad
    prop_tiles = _select_tiles(n_pad, prop_width, n_pad, 2, 2, 2, vmem_budget)
    tile_mask = None
    if edge_index is not None:
        tile_mask = adjacency_tile_mask(edge_index, n, n_pad,
                                        prop_tiles[0], prop_tiles[2])

    # NOTE: A_hat and the intermediate hop live in bf16 (f32 MXU accumulation
    # bounds the compounded rounding; tolerance documented in the check below).
    # Padded all-zero rows pick up the bias in the final pass and are sliced off.
    if f_out < f_in:
        # Linear first so both N^2 propagations run on the narrower width.
        # Bias is still added only at the very end (A_hat @ b != b).
        z = pallas_matmul(x_p, w_p, out_dtype=jnp.bfloat16,
                          vmem_budget=vmem_budget)                          # [N, F_out]
        h = pallas_matmul(a_p, z, out_dtype=jnp.bfloat16, tiles=prop_tiles,
                          tile_mask=tile_mask, vmem_budget=vmem_budget)     # hop 1
        out = pallas_matmul(a_p, h, bias=b_p, out_dtype=jnp.float32,
                            tiles=prop_tiles, tile_mask=tile_mask,
                            vmem_budget=vmem_budget)                        # hop 2 + bias
    else:
        h = pallas_matmul(a_p, x_p, out_dtype=jnp.bfloat16, tiles=prop_tiles,
                          tile_mask=tile_mask, vmem_budget=vmem_budget)     # hop 1
        h = pallas_matmul(a_p, h, out_dtype=jnp.bfloat16, tiles=prop_tiles,
                          tile_mask=tile_mask, vmem_budget=vmem_budget)     # hop 2
        out = pallas_matmul(h, w_p, bias=b_p, out_dtype=jnp.float32,
                            vmem_budget=vmem_budget)                        # linear + bias

    return out[:n, :f_out]


if __name__ == "__main__":
    num_nodes = 8
    in_feats = 16
    out_feats = 32

    key = jax.random.PRNGKey(0)
    kx, kw, kb = jax.random.split(key, 3)

    # node features
    x = jax.random.normal(kx, (num_nodes, in_feats), dtype=jnp.float32)

    # a small deterministic directed ring graph (both directions)
    fwd = jnp.stack([jnp.arange(num_nodes), (jnp.arange(num_nodes) + 1) % num_nodes])
    bwd = jnp.stack([(jnp.arange(num_nodes) + 1) % num_nodes, jnp.arange(num_nodes)])
    edge_index = jnp.concatenate([fwd, bwd], axis=1).astype(jnp.int32)  # [2, E]

    # deterministic linear parameters (stand-in for SGConv's nn.Linear weights)
    bound = 1.0 / jnp.sqrt(jnp.float32(in_feats))
    w = jax.random.uniform(kw, (in_feats, out_feats), jnp.float32, -bound, bound)
    b = jax.random.uniform(kb, (1, out_feats), jnp.float32, -bound, bound)

    # Pad N to a multiple of 256 so the chosen tiles always divide it, and build
    # A_hat directly padded + bf16 (no separate N^2 pad/cast pass).
    n_pad = _round_up(max(num_nodes, 256), 256)
    a_hat_bf16 = gcn_norm_dense(edge_index, num_nodes, n_pad, dtype=jnp.bfloat16)

    out = sgc_forward(a_hat_bf16, x, w, b, edge_index=edge_index)
    out = jax.block_until_ready(out)

    # reference check in plain JAX (f32); kernel uses bf16 operands so compare
    # with bf16-level tolerance.
    ref_a = gcn_norm_dense(edge_index, num_nodes, num_nodes, dtype=jnp.float32)
    ref = ref_a @ (ref_a @ x) @ w + b
    assert out.shape == (num_nodes, out_feats)
    assert jnp.allclose(out, ref, atol=5e-2, rtol=5e-2), (
        float(jnp.max(jnp.abs(out - ref))))

    print("KERNEL_OK")
</pallas_src>

<mosaic_0001>
module attributes {stable_mosaic.version = 11 : i64} {
  func.func @_mm_kernel(%arg0: i32, %arg1: i32, %arg2: i32, %arg3: memref<2x1xi32, #tpu.memory_space<smem>>, %arg4: memref<2x1xi32, #tpu.memory_space<smem>>, %arg5: memref<128x256xbf16, #tpu.memory_space<vmem>>, %arg6: memref<256x128xbf16, #tpu.memory_space<vmem>>, %arg7: memref<128x128xbf16, #tpu.memory_space<vmem>>, %arg8: memref<128x128xf32, #tpu.memory_space<vmem>>) attributes {dimension_semantics = [#tpu.dimension_semantics<parallel>, #tpu.dimension_semantics<parallel>, #tpu.dimension_semantics<arbitrary>], iteration_bounds = array<i64: 2, 1, 1>, scalar_prefetch = 2 : i64, scratch_operands = 1 : i64, tpu.core_type = #tpu.core_type<tc>, window_params = [{transform_indices = @transform_0, window_bounds = array<i64: 128, 256>}, {transform_indices = @transform_1, window_bounds = array<i64: 256, 128>}, {transform_indices = @transform_2, window_bounds = array<i64: 128, 128>}]} {
    %c0_i32 = arith.constant 0 : i32
    %0 = arith.cmpi eq, %arg2, %c0_i32 : i32
    %1 = arith.extui %0 : i1 to i32
    %c0_i32_0 = arith.constant 0 : i32
    %2 = arith.cmpi ne, %1, %c0_i32_0 : i32
    scf.if %2 {
      %cst = arith.constant 0.000000e+00 : f32
      %12 = vector.broadcast %cst : f32 to vector<128x128xf32>
      %c0 = arith.constant 0 : index
      %c0_5 = arith.constant 0 : index
      %13 = vector.load %arg8[%c0, %c0_5] : memref<128x128xf32, #tpu.memory_space<vmem>>, vector<128x128xf32>
      tpu.vector_store %arg8[%c0, %c0_5], %12 {strides = array<i32>} : memref<128x128xf32, #tpu.memory_space<vmem>>, vector<128x128xf32>,
    } else {
    }
    %3 = arith.index_cast %arg0 : i32 to index
    %4 = arith.index_cast %arg2 : i32 to index
    %5 = memref.load %arg3[%3, %4] : memref<2x1xi32, #tpu.memory_space<smem>>
    %c0_i32_1 = arith.constant 0 : i32
    %6 = arith.cmpi ne, %5, %c0_i32_1 : i32
    %7 = arith.extui %6 : i1 to i32
    %c0_i32_2 = arith.constant 0 : i32
    %8 = arith.cmpi ne, %7, %c0_i32_2 : i32
    scf.if %8 {
      %c0 = arith.constant 0 : index
      %c0_5 = arith.constant 0 : index
      %12 = vector.load %arg8[%c0, %c0_5] : memref<128x128xf32, #tpu.memory_space<vmem>>, vector<128x128xf32>
      %c0_6 = arith.constant 0 : index
      %c0_7 = arith.constant 0 : index
      %13 = vector.load %arg5[%c0_6, %c0_7] : memref<128x256xbf16, #tpu.memory_space<vmem>>, vector<128x256xbf16>
      %c0_8 = arith.constant 0 : index
      %c0_9 = arith.constant 0 : index
      %14 = vector.load %arg6[%c0_8, %c0_9] : memref<256x128xbf16, #tpu.memory_space<vmem>>, vector<256x128xbf16>
      %cst = arith.constant dense<0.000000e+00> : vector<128x128xf32>
      %15 = tpu.matmul %13, %14, %cst {dimension_numbers = #tpu.dot_dimension_numbers<[1], [0], [0], [1], [0, 0, 1, 1], [], []>} : vector<128x256xbf16>, vector<256x128xbf16>, vector<128x128xf32> -> vector<128x128xf32>
      %16 = arith.addf %12, %15 : vector<128x128xf32>
      %c0_10 = arith.constant 0 : index
      %c0_11 = arith.constant 0 : index
      %17 = vector.load %arg8[%c0_10, %c0_11] : memref<128x128xf32, #tpu.memory_space<vmem>>, vector<128x128xf32>
      tpu.vector_store %arg8[%c0_10, %c0_11], %16 {strides = array<i32>} : memref<128x128xf32, #tpu.memory_space<vmem>>, vector<128x128xf32>,
    } else {
    }
    %c0_i32_3 = arith.constant 0 : i32
    %9 = arith.cmpi eq, %arg2, %c0_i32_3 : i32
    %10 = arith.extui %9 : i1 to i32
    %c0_i32_4 = arith.constant 0 : i32
    %11 = arith.cmpi ne, %10, %c0_i32_4 : i32
    scf.if %11 {
      %c0 = arith.constant 0 : index
      %c0_5 = arith.constant 0 : index
      %12 = vector.load %arg8[%c0, %c0_5] : memref<128x128xf32, #tpu.memory_space<vmem>>, vector<128x128xf32>
      %13 = arith.truncf %12 : vector<128x128xf32> to vector<128x128xbf16>
      %c0_6 = arith.constant 0 : index
      %c0_7 = arith.constant 0 : index
      %14 = vector.load %arg7[%c0_6, %c0_7] : memref<128x128xbf16, #tpu.memory_space<vmem>>, vector<128x128xbf16>
      tpu.vector_store %arg7[%c0_6, %c0_7], %13 {strides = array<i32>} : memref<128x128xbf16, #tpu.memory_space<vmem>>, vector<128x128xbf16>,
    } else {
    }
    return
  }
  func.func @transform_0(%arg0: i32, %arg1: i32, %arg2: i32, %arg3: memref<2x1xi32, #tpu.memory_space<smem>>, %arg4: memref<2x1xi32, #tpu.memory_space<smem>>) -> (i32, i32) {
    %0 = arith.index_cast %arg0 : i32 to index
    %1 = arith.index_cast %arg2 : i32 to index
    %2 = memref.load %arg4[%0, %1] : memref<2x1xi32, #tpu.memory_space<smem>>
    %c0_i32 = arith.constant 0 : i32
    return %arg0, %2 : i32, i32
  }
  func.func @transform_1(%arg0: i32, %arg1: i32, %arg2: i32, %arg3: memref<2x1xi32, #tpu.memory_space<smem>>, %arg4: memref<2x1xi32, #tpu.memory_space<smem>>) -> (i32, i32) {
    %0 = arith.index_cast %arg0 : i32 to index
    %1 = arith.index_cast %arg2 : i32 to index
    %2 = memref.load %arg4[%0, %1] : memref<2x1xi32, #tpu.memory_space<smem>>
    %c0_i32 = arith.constant 0 : i32
    return %2, %arg1 : i32, i32
  }
  func.func @transform_2(%arg0: i32, %arg1: i32, %arg2: i32, %arg3: memref<2x1xi32, #tpu.memory_space<smem>>, %arg4: memref<2x1xi32, #tpu.memory_space<smem>>) -> (i32, i32) {
    %c0_i32 = arith.constant 0 : i32
    return %arg0, %arg1 : i32, i32
  }
}

</mosaic_0001>

<bundles_post_ra>
// kernel: tpu_custom_call.1
= control target key start
LH: loop header
LB: loop body
LE: loop exit
PB: predicated region body
PF: predicated region fallthrough
CT: control target
= control target key end

     0   :  { %s1987_s0 = inlined_call_operand.vmem [shape: s32[2,1], index: 0, kind: input, shape index: {}]   ;;  %s1988_s2 = inlined_call_operand.hbm [shape: bf16[256,256], index: 2, kind: input, shape index: {}]   ;;  %s1989_s3 = inlined_call_operand.hbm [shape: bf16[256,128], index: 3, kind: input, shape index: {}]   ;;  %s1990_s4 = inlined_call_operand.hbm [shape: bf16[256,128], index: 4, kind: output, shape index: {}]   ;;  %s1991_s1 = inlined_call_operand.vmem [shape: s32[2,1], index: 1, kind: input, shape index: {}]  }
   0x1   :  { %2004 = sst [smem:[#allocation28_spill]] %s1990_s4  ;;  %s9_s17 = sshll.u32 %s1987_s0, 4  ;;  %s10_s17 = int_to_ptr.vmem [resolvable:$true] %s9_s17 }
   0x2   :  { %s13_s20 = sshll.u32 %s1991_s1, 4  ;;  %s1336_s21 = scalar_lea.vmem %s10_s17, 32  ;;  %s14_s20 = int_to_ptr.vmem [resolvable:$true] %s13_s20 }
   0x3   :  { %p1337_p0 = scmp.ne.s32.totalorder %s10_s17, %s1336_s21  ;;  %p1341_p1 = scmp.lt.s32.totalorder %s10_s17, %s10_s17 }
   0x4   :  { %p1342_p2 = scmp.lt.s32.totalorder %s1336_s21, %s1336_s21 }
   0x6   :  { %p1343_p3 = por %p1342_p2, %p1341_p1 }
   0x8   :  { %p1344_p4 = pnand %p1343_p3, %p1337_p0 }
   0xa   :  { %1347 = shalt.err (!%p1344_p4)  }
   0xb   :  { %s1558_s22 = smov [#allocation4]   ;;  %s1348_s23 = scalar_lea.vmem %s14_s20, 32 }
   0xc   :  { %12 = dma.vmem_to_smem %s10_s17, 32, %s1558_s22, [#allocation3] }
   0xd   :  { %p1349_p5 = scmp.ne.s32.totalorder %s14_s20, %s1348_s23  ;;  %p1353_p6 = scmp.lt.s32.totalorder %s14_s20, %s14_s20 }
   0xe   :  { %p1354_p7 = scmp.lt.s32.totalorder %s1348_s23, %s1348_s23 }
  0x10   :  { %p1355_p8 = por %p1354_p7, %p1353_p6 }
  0x12   :  { %p1356_p9 = pnand %p1355_p8, %p1349_p5 }
  0x14   :  { %1359 = shalt.err (!%p1356_p9)  }
  0x15   :  { %s1559_s0 = smov [#allocation5]  }
  0x16   :  { %16 = dma.vmem_to_smem %s14_s20, 32, %s1559_s0, [#allocation3] }
  0x17   :  { %1496 = dma.done.wait [#allocation3], 64 }
  0x18   :  { %1497 = vsyncadd [#allocation3], 4294967232 }
  0x19   :  { %18 = sfence }
  0x1a   :  { %19 = vsyncpa [#allocation7], 0 }
  0x1b   :  { %21 = vsyncpa [#allocation7 + $0x1], 0 }
  0x1c   :  { %22 = vsyncpa [#allocation10], 0 }
  0x1d   :  { %24 = vsyncpa [#allocation10 + $0x1], 0 }
  0x1e   :  { %25 = vsyncpa [#allocation8], 0 }
  0x1f   :  { %27 = vsyncpa [#allocation8 + $0x1], 0  ;;  %s1601_s1 = smov 0   ;;  %s1603_s24 = smov 0  }
  0x20   :  { %s1605_s25 = smov 0   ;;  %s1607_s26 = smov 0  }
  0x21   :  { %s1609_s27 = smov 0   ;;  %s1611_s28 = smov 0  }
  0x22   :  { %s1613_s29 = smov 0   ;;  %s1615_s30 = smov 0  }
  0x23   :  { %s1617_s5 = smov 0   ;;  %s1619_s6 = smov 0  }
  0x24   :  { %s1621_s7 = smov 0   ;;  %s1623_s8 = smov 0  }
  0x25 LB: > { %2005 = sst [smem:[#allocation20_spill]] %s1512_s1  ;;  %s941_s9 = sadd.s32 4294967295, %s1556_s8   ;;  %s1556_s8 = sphi %s1623_s8, %s33_s8   ;;  %s1552_s7 = sphi %s1621_s7, %s2052_s7   ;;  %s1548_s6 = sphi %s1619_s6, %s2051_s6   ;;  %s1544_s5 = sphi %s1617_s5, %s2040_s5   ;;  %s1540_s30 = sphi %s1615_s30, %s2050_s30   ;;  %s1536_s29 = sphi %s1613_s29, %s2049_s29   ;;  %s1532_s28 = sphi %s1611_s28, %s2048_s28   ;;  %s1528_s27 = sphi %s1609_s27, %s2047_s27   ;;  %s1524_s26 = sphi %s1607_s26, %s2046_s26   ;;  %s1520_s25 = sphi %s1605_s25, %s2045_s25   ;;  %s1516_s24 = sphi %s1603_s24, %s2044_s24   ;;  %s1512_s1 = sphi %s1601_s1, %s2043_s1  }
  0x26   : > { %2006 = sst [smem:[#allocation21_spill]] %s1520_s25  ;;  %s942_s10 = sadd.s32 4294967294, %s1556_s8  }
  0x27   : > { %2007 = sst [smem:[#allocation22_spill]] %s1544_s5  ;;  %s52_s11 = sadd.s32 1, %s1552_s7 }
  0x28   : > { %2008 = sst [smem:[#allocation23_spill]] %s1552_s7  ;;  %s1663_s12 = sshll.u32 %s1552_s7, 7 }
  0x29   : > { %p54_p10 = scmp.ge.s32.totalorder %s52_s11, 2  ;;  %s63_s13 = sld [smem:[#allocation5 + %s1663_s12]] }
  0x2a   : > { %s77_s14 = sadd.s32 1, %s1544_s5  ;;  %p84_p11 = scmp.ne.s32.totalorder %s1544_s5, %s1540_s30 }
  0x2b   : > { %s2054_s11 = smov (%p54_p10, %s52_s11), 0  ;;  %p2000_p12 = scmp.eq.s32.totalorder %s1556_s8, 0 }
  0x2c   : > { %2009 = sst [smem:[#allocation24_spill]] %s2054_s11  ;;  %p90_p13 = scmp.ne.s32.totalorder %s1540_s30, %s1536_s29 }
  0x2d   : > { %s944_s15 = sshll.u32 %s2054_s11, 7  ;;  %s72_s16 = ssub.s32 %s1552_s7, %s2054_s11 }
  0x2e   : > { %s71_s17 = sld [smem:[#allocation5 + %s944_s15]]  ;;  %p1678_p0 = por %p2000_p12, %p84_p11 }
  0x2f   : > { %p1682_p1 = scmp.eq.s32.totalorder %s941_s9, 0  ;;  %s1687_s20 = sld [smem:[#allocation5 + %s1663_s12]] }
  0x30   : > { %s1689_s21 = sld [smem:[#allocation5 + %s944_s15]]  ;;  %p147_p2 = scmp.eq.s32.totalorder %s72_s16, 0 }
  0x31   : > { %s2011_s19 = scalar_select %p1682_p1, 1, 0 }
  0x32   : > { %p1693_p3 = por %p1682_p1, %p90_p13  ;;  %s149_s23 = sadd.s32 1, %s1520_s25 }
  0x33   : > { %s1699_s0 = scalar_select %p147_p2, %s1520_s25, %s149_s23  }
  0x34   : > { %s2012_s22 = scalar_select %p1693_p3, 1, 0 }
  0x35   : > { %2013 = sst [smem:[#allocation25_spill]] %s1699_s0  ;;  %p159_p4 = scmp.ne.s32.totalorder %s1520_s25, %s1516_s24 }
  0x36   : > { %p160_p5 = scmp.eq.s32.totalorder %s941_s9, 1  ;;  %s73_s29 = ssub.s32 %s63_s13, %s71_s17 }
  0x37   : > { %p165_p6 = scmp.ne.s32.totalorder %s1516_s24, %s1512_s1  ;;  %s74_s15 = sor.u32 %s73_s29, %s72_s16 }
  0x38   : > { %p1705_p7 = por %p160_p5, %p159_p4  ;;  %p75_p8 = scmp.eq.s32.totalorder %s74_s15, 0 }
  0x39   : > { %p166_p9 = scmp.eq.s32.totalorder %s942_s10, 1  ;;  %p1999_p11 = scmp.lt.s32.totalorder %s1556_s8, 2 }
  0x3a   : > { %s2014_s11 = scalar_select %p1705_p7, 1, 0 }
  0x3b   : > { %s1712_s23 = scalar_select %p75_p8, %s1544_s5, %s77_s14  }
  0x3c   : > { %p1714_p13 = por %p166_p9, %p165_p6  ;;  %s186_s13 = sand.u32 1, %s1544_s5  }
  0x3d   : > { %2015 = sst [smem:[#allocation26_spill]] %s1712_s23  ;;  %s949_s16 = sshll.u32 %s186_s13, 7 }
  0x3e   : > { %s2016_s9 = scalar_select %p1714_p13, 1, 0 }
  0x3f   : > { %s1018_s17 = sshll.u32 %s1552_s7, 5  ;;  %s190_s10 = scalar_lea.vmem [#allocation6], %s949_s16 }
  0x40   : > { %2017 = sst [smem:[#allocation27_spill]] %s2016_s9  ;;  %s208_s14 = sshll.u32 %s190_s10, 4  ;;  %s1737_s14 = int_to_ptr.vmem [resolvable:$true] %s208_s14 }
  0x41   : > { %s1164_s29 = scalar_select %p1678_p0, [#allocation5], [#allocation12] }
  0x42   : > { %s1165_s15 = scalar_select %p1678_p0, %s1663_s12, 0 }
  0x43   : > { %s2056_s29 = smov (!%p1999_p11, %s1164_s29), [#allocation14]  ;;  %p1733_p2 = pnand %p1999_p11, %p1678_p0 }
  0x44   : > { %s2058_s15 = smov (!%p1999_p11, %s1165_s15), 0  ;;  %p959_p4 = scmp.ge.s32.totalorder %s1556_s8, 1 }
  0x45   : > { %s198_s7 = sld [smem:[%s2056_s29 + %s2058_s15]]  ;;  %p246_p5 = scmp.lt.s32.totalorder %s1556_s8, 3 }
  0x46   : > { %s116_s18 = ssub.s32 %s1687_s20, %s1689_s21  ;;  %s1756_s15 = scalar_lea.sflag [#allocation7], %s186_s13 }
  0x47   : > { %p1741_p6 = pnand %p959_p4, %p246_p5  ;;  %p1752_p0 = scmp.eq.s32.totalorder %s116_s18, 0 }
  0x48   : > { %p1362_p9 = pneg %p1733_p2  ;;  %s1365_s20 = scalar_lea.hbm %s1988_s2, 4096 }
  0x49   : > { %s2019_s5 = scalar_select %p1741_p6, 1, 0 }
  0x4b   : > { %s952_s0 = sshll.u32 %s198_s7, 1 }
  0x4c   : > { %s205_s16 = sadd.s32 %s1018_s17, %s952_s0 }
  0x4d   : > { %s954_s10 = sshll.u32 %s205_s16, 6 }
  0x4e   : > { %s1750_s1 = scalar_lea.hbm %s1988_s2, %s954_s10 }
  0x4f   : > { %s1360_s4 = scalar_lea.hbm %s1750_s1, 2048  ;;  %p1366_p10 = scmp.lt.u32.totalorder %s1750_s1, %s1988_s2 }
  0x50   : > { %p1361_p8 = scmp.ne.s32.totalorder %s1750_s1, %s1360_s4  ;;  %p1367_p11 = scmp.lt.u32.totalorder %s1365_s20, %s1360_s4 }
  0x51   : > { %p1369_p13 = scmp.lt.u32.totalorder %s1360_s4, %s1750_s1 }
  0x52   : > { %p1363_p4 = pnand %p1362_p9, %p1361_p8  ;;  %p1368_p12 = por %p1367_p11, %p1366_p10 }
  0x54   : > { %p1364_p5 = pneg %p1363_p4  ;;  %p1370_p7 = por %p1369_p13, %p1368_p12 }
  0x56   : > { %p1371_p3 = pnand %p1370_p7, %p1364_p5 }
  0x58   : > { %1374 = shalt.err (!%p1371_p3)
}
  0x59   : > { %s1375_s9 = scalar_lea.vmem %s1737_s14, 2048  ;;  %s1560_s13 = smov [#allocation6]  }
  0x5a   : > { %p1376_p8 = scmp.ne.s32.totalorder %s1737_s14, %s1375_s9  ;;  %s1380_s17 = sshll.u32 %s1560_s13, 4  ;;  %s1381_s17 = int_to_ptr.vmem [resolvable:$false] %s1380_s17 }
  0x5b   : > { %s1382_s16 = scalar_lea.vmem %s1381_s17, 4096  ;;  %p1383_p1 = scmp.lt.s32.totalorder %s1737_s14, %s1381_s17 }
  0x5c   : > { %p1378_p4 = pnand %p1376_p8, %p1362_p9  ;;  %p1384_p10 = scmp.lt.s32.totalorder %s1382_s16, %s1375_s9 }
  0x5e   : > { %p1379_p6 = pneg %p1378_p4  ;;  %p1385_p11 = por %p1384_p10, %p1383_p1 }
  0x60   : > { %p1386_p12 = pnand %p1385_p11, %p1379_p6 }
  0x62   : > { %1389 = shalt.err (!%p1386_p12)
}
  0x63   : > { %s1561_s4 = smov 128   ;;  %s1562_s10 = smov 8  }
  0x64   : > { %1179 = dma.hbm_to_vmem [thread:$0]  (!%p1733_p2), %s1750_s1, 2048, %s1737_s14, %s1756_s15, %s1561_s4, %s1561_s4, %s1562_s10  }
  0x65   : > { %s121_s18 = sadd.s32 1, %s1532_s28  ;;  %p128_p1 = scmp.ne.s32.totalorder %s1532_s28, %s1528_s27 }
  0x66   : > { %s1790_s25 = scalar_select %p1752_p0, %s1532_s28, %s121_s18  }
  0x67   : > { %p134_p3 = scmp.ne.s32.totalorder %s1528_s27, %s1524_s26  ;;  %p2021_p7 = scmp.eq.s32.totalorder %s1556_s8, 0 }
  0x68   : > { %s218_s7 = sand.u32 1, %s1532_s28   ;;  %p2022_p6 = scmp.ne.s32.totalorder %s2011_s19, 0 }
  0x69   : > { %p130_p13 = por %p128_p1, %p2021_p7  ;;  %s955_s21 = sshll.u32 %s218_s7, 7 }
  0x6a   : > { %p1799_p9 = por %p134_p3, %p2022_p6  ;;  %p2024_p5 = scmp.lt.s32.totalorder %s1556_s8, 2 }
  0x6b   : > { %s1167_s1 = scalar_select %p130_p13, [#allocation5], [#allocation13] }
  0x6c   : > { %p1805_p8 = pnand %p2024_p5, %p130_p13  ;;  %s2060_s12 = smov (!%p130_p13, %s1663_s12), 0 }
  0x6d   : > { %p2026_p2 = pmov %p2024_p5  ;;  %s222_s19 = scalar_lea.vmem [#allocation9], %s955_s21 }
  0x6e   : > { %s238_s23 = sshll.u32 %s222_s19, 4  ;;  %s1821_s13 = scalar_lea.sflag [#allocation10], %s218_s7  ;;  %s1814_s23 = int_to_ptr.vmem [resolvable:$true] %s238_s23 }
  0x6f   : > { %s2062_s1 = smov (!%p2026_p2, %s1167_s1), [#allocation15]  ;;  %p2027_p0 = pmov %p2026_p2 }
  0x70   : > { %p1392_p10 = pneg %p1805_p8  ;;  %s1395_s4 = scalar_lea.hbm %s1989_s3, 2048 }
  0x71   : > { %s2064_s12 = smov (!%p2027_p0, %s2060_s12), 0 }
  0x72   : > { %s230_s26 = sld [smem:[%s2062_s1 + %s2064_s12]] }
  0x78   : > { %s1019_s14 = sshll.u32 %s230_s26, 11 }
  0x79   : > { %s1819_s9 = scalar_lea.hbm %s1989_s3, %s1019_s14 }
  0x7a   : > { %s1390_s17 = scalar_lea.hbm %s1819_s9, 2048  ;;  %p1396_p1 = scmp.lt.u32.totalorder %s1819_s9, %s1989_s3 }
  0x7b   : > { %p1391_p4 = scmp.ne.s32.totalorder %s1819_s9, %s1390_s17  ;;  %p1397_p3 = scmp.lt.u32.totalorder %s1395_s4, %s1390_s17 }
  0x7c   : > { %p1399_p13 = scmp.lt.u32.totalorder %s1390_s17, %s1819_s9 }
  0x7d   : > { %p1393_p11 = pnand %p1392_p10, %p1391_p4  ;;  %p1398_p7 = por %p1397_p3, %p1396_p1 }
  0x7f   : > { %p1394_p12 = pneg %p1393_p11  ;;  %p1400_p6 = por %p1399_p13, %p1398_p7 }
  0x81   : > { %p1401_p5 = pnand %p1400_p6, %p1394_p12 }
  0x83   : > { %1404 = shalt.err (!%p1401_p5)
}
  0x84   : > { %s1405_s7 = scalar_lea.vmem %s1814_s23, 2048  ;;  %s1563_s21 = smov [#allocation9]  }
  0x85   : > { %p1406_p2 = scmp.ne.s32.totalorder %s1814_s23, %s1405_s7  ;;  %s1410_s1 = sshll.u32 %s1563_s21, 4  ;;  %s1411_s1 = int_to_ptr.vmem [resolvable:$false] %s1410_s1 }
  0x86   : > { %s1412_s26 = scalar_lea.vmem %s1411_s1, 4096  ;;  %p1413_p11 = scmp.lt.s32.totalorder %s1814_s23, %s1411_s1 }
  0x87   : > { %p1408_p0 = pnand %p1406_p2, %p1392_p10  ;;  %p1414_p1 = scmp.lt.s32.totalorder %s1412_s26, %s1405_s7 }
  0x89   : > { %p1409_p4 = pneg %p1408_p0  ;;  %p1415_p3 = por %p1414_p1, %p1413_p11 }
  0x8b   : > { %p1416_p7 = pnand %p1415_p3, %p1409_p4 }
  0x8d   : > { %1419 = shalt.err (!%p1416_p7)
}
  0x8e   : > { %s1564_s19 = smov 64   ;;  %s1565_s14 = smov 4  }
  0x8f   : > { %1184 = dma.hbm_to_vmem [thread:$0]  (!%p1805_p8), %s1819_s9, 2048, %s1814_s23, %s1821_s13, %s1564_s19, %s1564_s19, %s1565_s14  }
  0x90   : > { %p2028_p10 = scmp.ne.s32.totalorder %s2019_s5, 0 }
  0x91   : > { %s252_s29 = sand.u32 (!%p2028_p10), 1, %s1540_s30   ;;  %p2029_p12 = scmp.ne.s32.totalorder (!%p2028_p10), %s2012_s22, 0 }
  0x92   : > { %250 = sbr.rel (%p2028_p10) target bundleno = 469 (0x1d5), region = 28  ;;  %s960_s15 = sshll.u32 (!%p2028_p10), %s252_s29, 7 }
  0x93   : > { %s253_s17 = scalar_lea.sflag (!%p2028_p10), [#allocation7], %s252_s29  ;;  %s1852_s12 = scalar_lea.vmem (!%p2028_p10), [#allocation6], %s960_s15 }
  0x99   : > { %1499 = dma.done.wait (%p2029_p12), %s253_s17, 2048  }
  0x9a   : > { %1501 = vsyncadd (%p2029_p12), %s253_s17, 4294965248  ;;  %s261_s16 = sand.u32 1, %s1528_s27  }
  0x9b   : > { %s961_s0 = sshll.u32 %s261_s16, 7  ;;  %s262_s23 = scalar_lea.sflag [#allocation10], %s261_s16 }
  0x9c   : > { %s1859_s9 = scalar_lea.vmem [#allocation9], %s961_s0 }
  0x9d   : > { %1503 = dma.done.wait (%p1799_p9), %s262_s23, 2048  }
  0x9e   : > { %1505 = vsyncadd (%p1799_p9), %s262_s23, 4294965248  ;;  %s963_s5 = sshll.u32 %s1548_s6, 7  ;;  %s288_s13 = sand.u32 1, %s1516_s24   ;;  %v1566_v0 = vmov 0.0  }
  0x9f   : > { %s339_s4 = sld [smem:[#allocation4 + %s963_s5]]  ;;  %s962_s22 = sshll.u32 %s288_s13, 6  ;;  %316 = vst [vmem:[#allocation2] sm:$0xff] %v1566_v0  ;;  %317 = vst [vmem:[#allocation2 + $0x8] sm:$0xff] %v1566_v0 }
  0xa0   : > { %318 = vst [vmem:[#allocation2 + $0x10] sm:$0xff] %v1566_v0  ;;  %319 = vst [vmem:[#allocation2 + $0x18] sm:$0xff] %v1566_v0  ;;  %s1869_s20 = scalar_lea.vmem [#allocation11], %s962_s22 }
  0xa1   : > { %320 = vst [vmem:[#allocation2 + $0x20] sm:$0xff] %v1566_v0  ;;  %321 = vst [vmem:[#allocation2 + $0x28] sm:$0xff] %v1566_v0 }
  0xa2   : > { %322 = vst [vmem:[#allocation2 + $0x30] sm:$0xff] %v1566_v0  ;;  %323 = vst [vmem:[#allocation2 + $0x38] sm:$0xff] %v1566_v0 }
  0xa3   : > { %324 = vst [vmem:[#allocation2 + $0x40] sm:$0xff] %v1566_v0  ;;  %325 = vst [vmem:[#allocation2 + $0x48] sm:$0xff] %v1566_v0 }
  0xa4   : > { %326 = vst [vmem:[#allocation2 + $0x50] sm:$0xff] %v1566_v0  ;;  %327 = vst [vmem:[#allocation2 + $0x58] sm:$0xff] %v1566_v0 }
  0xa5   : > { %328 = vst [vmem:[#allocation2 + $0x60] sm:$0xff] %v1566_v0  ;;  %329 = vst [vmem:[#allocation2 + $0x68] sm:$0xff] %v1566_v0  ;;  %p964_p9 = scmp.eq.s32.totalorder %s339_s4, 0 }
  0xa6   : > { %330 = vst [vmem:[#allocation2 + $0x70] sm:$0xff] %v1566_v0  ;;  %331 = vst [vmem:[#allocation2 + $0x78] sm:$0xff] %v1566_v0  ;;  %v1296_v1 = vld [vmem:[%s1859_s9 + $0x40] sm:$0xff] (!%p964_p9)   ;;  %v1298_v3 = vld [vmem:[%s1859_s9 + $0x48] sm:$0xff] (!%p964_p9)  }
  0xa7   : > { %343 = sbr.rel (%p964_p9) target bundleno = 443 (0x1bb), region = 44  ;;  %v1297_v2 = vld [vmem:[%s1859_s9] sm:$0xff] (!%p964_p9)   ;;  %1084 = vmatprep.subr.bf16.mxu0 (!%p964_p9), %v1296_v1  ;;  %1148 = vmatprep.subr.bf16.mxu1 (!%p964_p9), %v1296_v1  ;;  %v1299_v4 = vld [vmem:[%s1859_s9 + $0x8] sm:$0xff] (!%p964_p9)   ;;  %v1300_v5 = vld [vmem:[%s1859_s9 + $0x50] sm:$0xff] (!%p964_p9)  }
  0xa8   : > { %1085 = vmatpush3.bf16.msra.mxu0 (!%p964_p9), %v1297_v2  ;;  %1156 = vmatpush3.bf16.msra.mxu1 (!%p964_p9), %v1297_v2  ;;  %v1301_v6 = vld [vmem:[%s1859_s9 + $0x10] sm:$0xff] (!%p964_p9)   ;;  %v1302_v7 = vld [vmem:[%s1859_s9 + $0x58] sm:$0xff] (!%p964_p9)   ;;  %v1304_v9 = vld [vmem:[%s1859_s9 + $0x60] sm:$0xff] (!%p964_p9)  }
  0xa9   : > { %1086 = vmatprep.subr.bf16.mxu0 (!%p964_p9), %v1298_v3  ;;  %1149 = vmatprep.subr.bf16.mxu1 (!%p964_p9), %v1298_v3  ;;  %v1303_v8 = vld [vmem:[%s1859_s9 + $0x18] sm:$0xff] (!%p964_p9)   ;;  %v1305_v10 = vld [vmem:[%s1859_s9 + $0x20] sm:$0xff] (!%p964_p9)   ;;  %v1306_v11 = vld [vmem:[%s1859_s9 + $0x68] sm:$0xff] (!%p964_p9)  }
  0xaa   : > { %v1314_v12 = vld [vmem:[%s1852_s12 + $0x4] ss:$8 sps:$4 sm:$0xff] (!%p964_p9)   ;;  %v1308_v15 = vld [vmem:[%s1859_s9 + $0x70] sm:$0xff] (!%p964_p9)   ;;  %v1310_v17 = vld [vmem:[%s1859_s9 + $0x78] sm:$0xff] (!%p964_p9)  }
  0xab   : > { %v1317_v13 = vld [vmem:[%s1852_s12 + $0x44] ss:$8 sps:$4 sm:$0xff] (!%p964_p9)   ;;  %616 = vmatprep.mubr.bf16.mxu0 (!%p964_p9), %v1314_v12  ;;  %v1309_v16 = vld [vmem:[%s1859_s9 + $0x30] sm:$0xff] (!%p964_p9)   ;;  %v1311_v18 = vld [vmem:[%s1859_s9 + $0x38] sm:$0xff] (!%p964_p9)  }
  0xac   : > { %1087 = vmatpush3.bf16.msra.mxu0 (!%p964_p9), %v1299_v4  ;;  %1157 = vmatpush3.bf16.msra.mxu1 (!%p964_p9), %v1299_v4  ;;  %v1307_v14 = vld [vmem:[%s1859_s9 + $0x28] sm:$0xff] (!%p964_p9)   ;;  %v1318_v21 = vld [vmem:[%s1852_s12 + $0x14] ss:$8 sps:$4 sm:$0xff] (!%p964_p9)   ;;  %v1322_v23 = vld [vmem:[%s1852_s12 + $0x10] ss:$8 sps:$4 sm:$0xff] (!%p964_p9)  }
  0xad   : > { %1088 = vmatprep.subr.bf16.mxu0 (!%p964_p9), %v1300_v5  ;;  %1150 = vmatprep.subr.bf16.mxu1 (!%p964_p9), %v1300_v5  ;;  %v1312_v19 = vld [vmem:[%s1852_s12] ss:$8 sps:$4 sm:$0xff] (!%p964_p9)   ;;  %v1320_v22 = vld [vmem:[%s1852_s12 + $0x54] ss:$8 sps:$4 sm:$0xff] (!%p964_p9)   ;;  %v1323_v24 = vld [vmem:[%s1852_s12 + $0x50] ss:$8 sps:$4 sm:$0xff] (!%p964_p9)  }
  0xae   : > { %648 = vmatprep.mubr.bf16.mxu1 %v1317_v13  ;;  %v1315_v20 = vld [vmem:[%s1852_s12 + $0x40] ss:$8 sps:$4 sm:$0xff]   ;;  %v1324_v25 = vld [vmem:[%s1852_s12 + $0x24] ss:$8 sps:$4 sm:$0xff]   ;;  %v1330_v29 = vld [vmem:[%s1852_s12 + $0x34] ss:$8 sps:$4 sm:$0xff]  }
  0xaf   : > { %v1326_v26 = vld [vmem:[%s1852_s12 + $0x64] ss:$8 sps:$4 sm:$0xff]   ;;  %v1328_v27 = vld [vmem:[%s1852_s12 + $0x20] ss:$8 sps:$4 sm:$0xff]   ;;  %v1332_v30 = vld [vmem:[%s1852_s12 + $0x74] ss:$8 sps:$4 sm:$0xff]  }
  0xb0   : > { %1089 = vmatpush3.bf16.msra.mxu0 %v1301_v6  ;;  %1158 = vmatpush3.bf16.msra.mxu1 %v1301_v6  ;;  %v1329_v28 = vld [vmem:[%s1852_s12 + $0x60] ss:$8 sps:$4 sm:$0xff]   ;;  %v1334_v31 = vld [vmem:[%s1852_s12 + $0x30] ss:$8 sps:$4 sm:$0xff]  }
  0xb1   : > { %1090 = vmatprep.subr.bf16.mxu0 %v1302_v7  ;;  %1151 = vmatprep.subr.bf16.mxu1 %v1302_v7  ;;  %v1335_v32 = vld [vmem:[%s1852_s12 + $0x70] ss:$8 sps:$4 sm:$0xff]   ;;  %v344_v35 = vld [vmem:[#allocation2] sm:$0xff]  ;;  %v345_v43 = vld [vmem:[#allocation2 + $0x8] sm:$0xff] }
  0xb2   : > { %v352_v37 = vld [vmem:[#allocation2 + $0x40] sm:$0xff]  ;;  %v353_v45 = vld [vmem:[#allocation2 + $0x48] sm:$0xff]  ;;  %v346_v55 = vld [vmem:[#allocation2 + $0x10] sm:$0xff] }
  0xb3   : > { %v354_v57 = vld [vmem:[#allocation2 + $0x50] sm:$0xff]  ;;  %v347_v63 = vld [vmem:[#allocation2 + $0x18] sm:$0xff]  ;;  %v356_v13 = vld [vmem:[#allocation2 + $0x60] sm:$0xff] }
  0xb4   : > { %1091 = vmatpush3.bf16.msra.mxu0 %v1303_v8  ;;  %1159 = vmatpush3.bf16.msra.mxu1 %v1303_v8  ;;  %v355_v1 = vld [vmem:[#allocation2 + $0x58] sm:$0xff] }
  0xb5   : > { %1092 = vmatprep.subr.bf16.mxu0 %v1304_v9  ;;  %1152 = vmatprep.subr.bf16.mxu1 %v1304_v9 }
  0xb8   : > { %1093 = vmatpush3.bf16.msra.mxu0 %v1305_v10  ;;  %1160 = vmatpush3.bf16.msra.mxu1 %v1305_v10 }
  0xb9   : > { %1094 = vmatprep.subr.bf16.mxu0 %v1306_v11  ;;  %1153 = vmatprep.subr.bf16.mxu1 %v1306_v11  ;;  %v348_v11 = vld [vmem:[#allocation2 + $0x20] sm:$0xff] }
  0xbc   : > { %1095 = vmatpush3.bf16.msra.mxu0 %v1307_v14  ;;  %1161 = vmatpush3.bf16.msra.mxu1 %v1307_v14 }
  0xbd   : > { %1096 = vmatprep.subr.bf16.mxu0 %v1308_v15  ;;  %1154 = vmatprep.subr.bf16.mxu1 %v1308_v15 }
  0xc0   : > { %1097 = vmatpush3.bf16.msra.mxu0 %v1309_v16  ;;  %1162 = vmatpush3.bf16.msra.mxu1 %v1309_v16 }
  0xc1   : > { %1098 = vmatprep.subr.bf16.mxu0 %v1310_v17  ;;  %1155 = vmatprep.subr.bf16.mxu1 %v1310_v17 }
  0xc4   : > { %1099 = vmatpush3.bf16.msra.mxu0 %v1311_v18  ;;  %1163 = vmatpush3.bf16.msra.mxu1 %v1311_v18 }
  0xc7   : > { %617 = vmatmul.mubr.bf16.vlgmr.msra.gmra.mrb[0].mxu0 %v1312_v19  ;;  %649 = vmatmul.mubr.bf16.vlgmr.msra.gmra.mrb[0].mxu1 %v1315_v20  ;;  %v349_v19 = vld [vmem:[#allocation2 + $0x28] sm:$0xff] }
  0xc8   : > { %624 = vmatprep.mubr.bf16.mxu0 %v1318_v21  ;;  %656 = vmatprep.mubr.bf16.mxu1 %v1320_v22  ;;  %v357_v21 = vld [vmem:[#allocation2 + $0x68] sm:$0xff] }
  0xcf   : > { %625 = vmatmul.mubr.bf16.gmra.mrb[4].mxu0 %v1322_v23  ;;  %657 = vmatmul.mubr.bf16.gmra.mrb[4].mxu1 %v1323_v24 }
  0xd0   : > { %632 = vmatprep.mubr.bf16.mxu0 %v1324_v25  ;;  %664 = vmatprep.mubr.bf16.mxu1 %v1326_v26 }
  0xd7   : > { %633 = vmatmul.mubr.bf16.gmra.mrb[8].mxu0 %v1328_v27  ;;  %665 = vmatmul.mubr.bf16.gmra.mrb[8].mxu1 %v1329_v28 }
  0xd8   : > { %640 = vmatprep.mubr.bf16.mxu0 %v1330_v29  ;;  %672 = vmatprep.mubr.bf16.mxu1 %v1332_v30 }
  0xdf   : > { %641 = vmatmul.mubr.bf16.gmra.mrb[12].mxu0 %v1334_v31  ;;  %673 = vmatmul.mubr.bf16.gmra.mrb[12].mxu1 %v1335_v32  ;;  %v350_v31 = vld [vmem:[#allocation2 + $0x30] sm:$0xff] }
 0x19a   : > { %v1100_v33 = vpop.f32.mrb[0].mxu0  ;;  %v1124_v34 = vpop.f32.mrb[0].mxu1 }
 0x19b   : > { %v1101_v36 = vpop.f32.mrb[1].mxu0  ;;  %v1125_v38 = vpop.f32.mrb[1].mxu1 }
 0x19c   : > { %v1102_v39 = vadd.f32 %v1101_v36, %v1100_v33  ;;  %v1126_v40 = vadd.f32 %v1125_v38, %v1124_v34  ;;  %v1103_v41 = vpop.f32.mrb[2].mxu0  ;;  %v1127_v42 = vpop.f32.mrb[2].mxu1  ;;  %v358_v33 = vld [vmem:[#allocation2 + $0x70] sm:$0xff] }
 0x19d   : > { %v1104_v44 = vpop.f32.mrb[3].mxu0  ;;  %v1128_v46 = vpop.f32.mrb[3].mxu1 }
 0x19e   : > { %v681_v47 = vadd.f32 %v1102_v39, %v344_v35  ;;  %v689_v48 = vadd.f32 %v1126_v40, %v352_v37  ;;  %v1105_v49 = vadd.f32 %v1104_v44, %v1103_v41  ;;  %v1129_v50 = vadd.f32 %v1128_v46, %v1127_v42  ;;  %v351_v39 = vld [vmem:[#allocation2 + $0x38] sm:$0xff] }
 0x19f   : > { %v359_v41 = vld [vmem:[#allocation2 + $0x78] sm:$0xff] }
 0x1a0   : > { %697 = vst [vmem:[#allocation2] sm:$0xff] %v681_v47  ;;  %705 = vst [vmem:[#allocation2 + $0x40] sm:$0xff] %v689_v48  ;;  %v682_v51 = vadd.f32 %v1105_v49, %v345_v43  ;;  %v690_v52 = vadd.f32 %v1129_v50, %v353_v45 }
 0x1a2   : > { %698 = vst [vmem:[#allocation2 + $0x8] sm:$0xff] %v682_v51  ;;  %706 = vst [vmem:[#allocation2 + $0x48] sm:$0xff] %v690_v52  ;;  %v1106_v53 = vpop.f32.mrb[4].mxu0  ;;  %v1130_v54 = vpop.f32.mrb[4].mxu1 }
 0x1a3   : > { %v1107_v56 = vpop.f32.mrb[5].mxu0  ;;  %v1131_v58 = vpop.f32.mrb[5].mxu1 }
 0x1a4   : > { %v1108_v59 = vadd.f32 %v1107_v56, %v1106_v53  ;;  %v1132_v60 = vadd.f32 %v1131_v58, %v1130_v54  ;;  %v1109_v61 = vpop.f32.mrb[6].mxu0  ;;  %v1133_v62 = vpop.f32.mrb[6].mxu1 }
 0x1a5   : > { %v1110_v0 = vpop.f32.mrb[7].mxu0  ;;  %v1134_v2 = vpop.f32.mrb[7].mxu1 }
 0x1a6   : > { %v683_v3 = vadd.f32 %v1108_v59, %v346_v55  ;;  %v691_v4 = vadd.f32 %v1132_v60, %v354_v57  ;;  %v1111_v5 = vadd.f32 %v1110_v0, %v1109_v61  ;;  %v1135_v6 = vadd.f32 %v1134_v2, %v1133_v62 }
 0x1a8   : > { %699 = vst [vmem:[#allocation2 + $0x10] sm:$0xff] %v683_v3  ;;  %707 = vst [vmem:[#allocation2 + $0x50] sm:$0xff] %v691_v4  ;;  %v684_v7 = vadd.f32 %v1111_v5, %v347_v63  ;;  %v692_v8 = vadd.f32 %v1135_v6, %v355_v1 }
 0x1aa   : > { %700 = vst [vmem:[#allocation2 + $0x18] sm:$0xff] %v684_v7  ;;  %708 = vst [vmem:[#allocation2 + $0x58] sm:$0xff] %v692_v8  ;;  %v1112_v9 = vpop.f32.mrb[8].mxu0  ;;  %v1136_v10 = vpop.f32.mrb[8].mxu1 }
 0x1ab   : > { %v1113_v12 = vpop.f32.mrb[9].mxu0  ;;  %v1137_v14 = vpop.f32.mrb[9].mxu1 }
 0x1ac   : > { %v1114_v15 = vadd.f32 %v1113_v12, %v1112_v9  ;;  %v1138_v16 = vadd.f32 %v1137_v14, %v1136_v10  ;;  %v1115_v17 = vpop.f32.mrb[10].mxu0  ;;  %v1139_v18 = vpop.f32.mrb[10].mxu1 }
 0x1ad   : > { %v1116_v20 = vpop.f32.mrb[11].mxu0  ;;  %v1140_v22 = vpop.f32.mrb[11].mxu1 }
 0x1ae   : > { %v685_v23 = vadd.f32 %v1114_v15, %v348_v11  ;;  %v693_v24 = vadd.f32 %v1138_v16, %v356_v13  ;;  %v1117_v25 = vadd.f32 %v1116_v20, %v1115_v17  ;;  %v1141_v26 = vadd.f32 %v1140_v22, %v1139_v18 }
 0x1b0   : > { %701 = vst [vmem:[#allocation2 + $0x20] sm:$0xff] %v685_v23  ;;  %709 = vst [vmem:[#allocation2 + $0x60] sm:$0xff] %v693_v24  ;;  %v686_v27 = vadd.f32 %v1117_v25, %v349_v19  ;;  %v694_v28 = vadd.f32 %v1141_v26, %v357_v21 }
 0x1b2   : > { %702 = vst [vmem:[#allocation2 + $0x28] sm:$0xff] %v686_v27  ;;  %710 = vst [vmem:[#allocation2 + $0x68] sm:$0xff] %v694_v28  ;;  %v1118_v29 = vpop.f32.mrb[12].mxu0  ;;  %v1142_v30 = vpop.f32.mrb[12].mxu1 }
 0x1b3   : > { %v1119_v32 = vpop.f32.mrb[13].mxu0  ;;  %v1143_v34 = vpop.f32.mrb[13].mxu1 }
 0x1b4   : > { %v1120_v35 = vadd.f32 %v1119_v32, %v1118_v29  ;;  %v1144_v36 = vadd.f32 %v1143_v34, %v1142_v30  ;;  %v1121_v37 = vpop.f32.mrb[14].mxu0  ;;  %v1145_v38 = vpop.f32.mrb[14].mxu1 }
 0x1b5   : > { %v1122_v40 = vpop.f32.mrb[15].mxu0  ;;  %v1146_v42 = vpop.f32.mrb[15].mxu1 }
 0x1b6   : > { %v687_v43 = vadd.f32 %v1120_v35, %v350_v31  ;;  %v695_v44 = vadd.f32 %v1144_v36, %v358_v33  ;;  %v1123_v45 = vadd.f32 %v1122_v40, %v1121_v37  ;;  %v1147_v46 = vadd.f32 %v1146_v42, %v1145_v38 }
 0x1b8   : > { %703 = vst [vmem:[#allocation2 + $0x30] sm:$0xff] %v687_v43  ;;  %711 = vst [vmem:[#allocation2 + $0x70] sm:$0xff] %v695_v44  ;;  %v688_v47 = vadd.f32 %v1123_v45, %v351_v39  ;;  %v696_v48 = vadd.f32 %v1147_v46, %v359_v41 }
 0x1ba   : > { %704 = vst [vmem:[#allocation2 + $0x38] sm:$0xff] %v688_v47  ;;  %712 = vst [vmem:[#allocation2 + $0x78] sm:$0xff] %v696_v48 }
 0x1bb PF: > { %v716_v49 = vld [vmem:[#allocation2] sm:$0xff]  ;;  %v717_v50 = vld [vmem:[#allocation2 + $0x8] sm:$0xff]  ;;  %v718_v51 = vld [vmem:[#allocation2 + $0x10] sm:$0xff]  ;;  %s1036_s10 = sshll.u32 %s1548_s6, 10  ;;  %s827_s18 = sshll.u32 %s1869_s20, 4  ;;  %s1914_s18 = int_to_ptr.vmem [resolvable:$true] %s827_s18 }
 0x1bc   : > { %v1040_v52 = vpack.c.bf16 %v717_v50, %v716_v49  ;;  %v719_v53 = vld [vmem:[#allocation2 + $0x18] sm:$0xff]  ;;  %v720_v54 = vld [vmem:[#allocation2 + $0x20] sm:$0xff]  ;;  %v721_v55 = vld [vmem:[#allocation2 + $0x28] sm:$0xff]  ;;  %s2030_s21 = sld [smem:[#allocation28_spill]]  ;;  %s1922_s26 = scalar_lea.sflag [#allocation8], %s288_s13 }
 0x1bd   : > { %v1045_v56 = vpack.c.bf16 %v719_v53, %v718_v51  ;;  %v1050_v57 = vpack.c.bf16 %v721_v55, %v720_v54  ;;  %v724_v60 = vld [vmem:[#allocation2 + $0x40] sm:$0xff]  ;;  %v725_v62 = vld [vmem:[#allocation2 + $0x48] sm:$0xff]  ;;  %v726_v63 = vld [vmem:[#allocation2 + $0x50] sm:$0xff]  ;;  %s1420_s19 = scalar_lea.vmem %s1914_s18, 1024  ;;  %p2031_p13 = scmp.ne.s32.totalorder %s2014_s11, 0 }
 0x1be   : > { %1041 = vst [vmem:[%s1869_s20] sm:$0xff] %v1040_v52   ;;  %v727_v0 = vld [vmem:[#allocation2 + $0x58] sm:$0xff]  ;;  %v1060_v1 = vpack.c.bf16 %v725_v62, %v724_v60  ;;  %v728_v3 = vld [vmem:[#allocation2 + $0x60] sm:$0xff]  ;;  %v729_v4 = vld [vmem:[#allocation2 + $0x68] sm:$0xff]  ;;  %p1421_p8 = scmp.ne.s32.totalorder %s1914_s18, %s1420_s19  ;;  %s1567_s14 = smov [#allocation11]  }
 0x1bf   : > { %v722_v58 = vld [vmem:[#allocation2 + $0x30] sm:$0xff]  ;;  %1077 = vst [vmem:[%s1869_s20 + $0x8] sm:$0xff] %v1045_v56   ;;  %1078 = vst [vmem:[%s1869_s20 + $0x10] sm:$0xff] %v1050_v57   ;;  %v1065_v2 = vpack.c.bf16 %v727_v0, %v726_v63  ;;  %v1070_v6 = vpack.c.bf16 %v729_v4, %v728_v3  ;;  %s1424_s29 = sshll.u32 %s1567_s14, 4  ;;  %s1425_s29 = int_to_ptr.vmem [resolvable:$false] %s1424_s29 }
 0x1c0   : > { %v730_v5 = vld [vmem:[#allocation2 + $0x70] sm:$0xff]  ;;  %1080 = vst [vmem:[%s1869_s20 + $0x20] sm:$0xff] %v1060_v1   ;;  %p1422_p6 = pnand %p1421_p8, %p2031_p13  ;;  %s1426_s15 = scalar_lea.vmem %s1425_s29, 2048 }
 0x1c1   : > { %v723_v59 = vld [vmem:[#allocation2 + $0x38] sm:$0xff]  ;;  %1081 = vst [vmem:[%s1869_s20 + $0x28] sm:$0xff] %v1065_v2   ;;  %1082 = vst [vmem:[%s1869_s20 + $0x30] sm:$0xff] %v1070_v6   ;;  %p1427_p2 = scmp.lt.s32.totalorder %s1914_s18, %s1425_s29  ;;  %p1428_p0 = scmp.lt.s32.totalorder %s1426_s15, %s1420_s19 }
 0x1c2   : > { %v1055_v61 = vpack.c.bf16 %v723_v59, %v722_v58  ;;  %v731_v7 = vld [vmem:[#allocation2 + $0x78] sm:$0xff]  ;;  %s1912_s1 = scalar_lea.hbm %s2030_s21, %s1036_s10  ;;  %p1423_p5 = pneg %p1422_p6 }
 0x1c3   : > { %v1075_v8 = vpack.c.bf16 %v731_v7, %v730_v5  ;;  %p1429_p4 = por %p1428_p0, %p1427_p2 }
 0x1c4   : > { %1079 = vst [vmem:[%s1869_s20 + $0x18] sm:$0xff] %v1055_v61  }
 0x1c5   : > { %1083 = vst [vmem:[%s1869_s20 + $0x38] sm:$0xff] %v1075_v8   ;;  %p1430_p11 = pnand %p1429_p4, %p1423_p5 }
 0x1c7   : > { %1433 = shalt.err (!%p1430_p11)
}
 0x1c8   : > { %s1434_s17 = scalar_lea.hbm %s1912_s1, 1024  ;;  %s1438_s0 = scalar_lea.hbm %s2030_s21, 2048 }
 0x1c9   : > { %p1435_p1 = scmp.ne.s32.totalorder %s1912_s1, %s1434_s17  ;;  %p1439_p10 = scmp.lt.u32.totalorder %s1912_s1, %s2030_s21 }
 0x1ca   : > { %p1440_p12 = scmp.lt.u32.totalorder %s1438_s0, %s1434_s17  ;;  %p1442_p8 = scmp.lt.u32.totalorder %s1434_s17, %s1912_s1 }
 0x1cb   : > { %p1436_p3 = pnand %p1435_p1, %p2031_p13 }
 0x1cc   : > { %p1441_p9 = por %p1440_p12, %p1439_p10 }
 0x1cd   : > { %p1437_p7 = pneg %p1436_p3 }
 0x1ce   : > { %p1443_p6 = por %p1442_p8, %p1441_p9 }
 0x1d0   : > { %p1444_p5 = pnand %p1443_p6, %p1437_p7 }
 0x1d2   : > { %1447 = shalt.err (!%p1444_p5)
}
 0x1d3   : > { %s1568_s5 = smov 64   ;;  %s1569_s13 = smov 4  }
 0x1d4   : > { %1172 = dma.vmem_to_hbm [thread:$0]  (%p2031_p13), %s1914_s18, 1024, %s1912_s1, %s1922_s26, %s1568_s5, %s1568_s5, %s1569_s13  }
 0x1d5 PF: > { %s2032_s4 = sld [smem:[#allocation20_spill]]  ;;  %s2033_s22 = sld [smem:[#allocation27_spill]] }
 0x1d6   : > { %p2035_p0 = scmp.ge.s32.totalorder %s1556_s8, 2 }
 0x1db   : > { %s842_s20 = sand.u32 1, %s2032_s4   ;;  %p2034_p2 = scmp.ne.s32.totalorder %s2033_s22, 0 }
 0x1dc   : > { %s843_s10 = scalar_lea.sflag [#allocation8], %s842_s20 }
 0x1dd   : > { %p1186_p4 = pnand %p2035_p0, %p2034_p2 }
 0x1df   : > { %1507 = dma.done.wait (!%p1186_p4), %s843_s10, 1024  }
 0x1e0   : > { %1509 = vsyncadd (!%p1186_p4), %s843_s10, 4294966272  ;;  %s33_s8 = sadd.s32 1, %s1556_s8   ;;  %s2036_s6 = sld [smem:[#allocation21_spill]] }
 0x1e1   : > { %p30_p11 = scmp.ge.s32.totalorder %s33_s8, 4   ;;  %s2037_s7 = sld [smem:[#allocation25_spill]] }
 0x1e2   : > { %s2038_s11 = smov %s1790_s25  ;;  %s2039_s18 = sld [smem:[#allocation22_spill]] }
 0x1e3   : > { %s2040_s5 = sld [smem:[#allocation26_spill]]  ;;  %s2041_s19 = sld [smem:[#allocation23_spill]] }
 0x1e4   : > { %s2042_s14 = sld [smem:[#allocation24_spill]]  ;;  %s2043_s1 = smov %s1516_s24 }
 0x1e5   : > { %s2046_s26 = smov %s1528_s27  ;;  %s2047_s27 = smov %s1532_s28 }
 0x1e6   : > { %s2044_s24 = smov %s2036_s6  ;;  %s2048_s28 = smov %s2038_s11 }
 0x1e7   : > { %s2045_s25 = smov %s2037_s7  ;;  %s2049_s29 = smov %s1540_s30 }
 0x1e8   : > { %s2050_s30 = smov %s2039_s18  ;;  %32 = sbr.rel (!%p30_p11) target bundleno = 37 (0x25), region = 98 }
 0x1e9   : > { %s2051_s6 = smov %s2041_s19 }
 0x1ea   : > { %s2052_s7 = smov %s2042_s14 }
 0x1ef   :  { %848 = vsyncpa [#allocation7], 1 }
 0x1f0   :  { %850 = vsyncpa [#allocation7 + $0x1], 1 }
 0x1f1   :  { %851 = vsyncpa [#allocation10], 1 }
 0x1f2   :  { %853 = vsyncpa [#allocation10 + $0x1], 1 }
 0x1f3   :  { %854 = vsyncpa [#allocation8], 1 }
 0x1f4   :  { %856 = vsyncpa [#allocation8 + $0x1], 1 }

</bundles_post_ra>
